<compile_context>
chip_gen: v7x
topology: tpu7x:2x2x1
jax: 0.10.0
libtpu: 0.0.40
codegen_flags: <defaults>
</compile_context>

<pallas_src>
import jax
import jax.numpy as jnp
from jax.experimental import pallas as pl
from jax.experimental.pallas import tpu as pltpu

_TILE_BYTES_TARGET = 4 * 1024 * 1024   # per-array tile cap (24 MiB resident w/ 2x buffers)
_TILE_BYTES_FLOOR = 512 * 1024         # don't shrink tiles below this for the step rule
_MIN_GRID_STEPS = 8                    # >= 4 steps per TC on v7x megacore


def _gate_skip_kernel(a_ref, b_ref, h_ref, x0_ref, o_ref):
    # a/b are fp32 scalars in SMEM; h/x0/o are (TM, L) VMEM tiles.
    a = a_ref[0]
    b = b_ref[0]
    h = h_ref[...].astype(jnp.float32)
    x = x0_ref[...].astype(jnp.float32)
    o_ref[...] = (a * h + b * x).astype(o_ref.dtype)


def _round_up(x, m):
    return ((x + m - 1) // m) * m


def _choose_tm(rows, lane, itemsize):
    """Pick the row-tile size: VMEM-capped, step-count-aware, sublane-legal."""
    row_bytes = lane * itemsize
    tm_cap = max(32, (_TILE_BYTES_TARGET // row_bytes) // 32 * 32)
    tm_floor = max(32, (_TILE_BYTES_FLOOR // row_bytes) // 32 * 32)

    tm = min(rows, tm_cap)
    if pl.cdiv(rows, tm) < _MIN_GRID_STEPS:
        # Shrink toward >= _MIN_GRID_STEPS grid steps, but never below the
        # per-tile floor (and never fragment inputs smaller than the floor).
        tm_steps = _round_up(pl.cdiv(rows, _MIN_GRID_STEPS), 32)
        tm = max(min(tm, tm_steps), min(tm_floor, rows))
    return tm


def gate_skip(h, x0, a, b, *, donate_h=False):
    """Pallas implementation of GateSkip.forward: a * h + b * x0."""
    assert h.shape == x0.shape and h.dtype == x0.dtype
    orig_shape = h.shape
    n = h.size

    a_s = jnp.asarray(a, dtype=jnp.float32).reshape(1)
    b_s = jnp.asarray(b, dtype=jnp.float32).reshape(1)

    # Pick a lane-dense last dim (largest multiple of 128 that divides N, <=1024).
    lane = 0
    for cand in (1024, 512, 256, 128):
        if n % cand == 0:
            lane = cand
            break

    pad = 0
    if lane == 0:
        # Total size not a multiple of 128: pad the flat array to 128 lanes so
        # the lane-dense kernel path is still used; slice the result afterwards.
        lane = 128
        pad = (-n) % lane
        h_flat = jnp.pad(h.reshape(-1), (0, pad))
        x_flat = jnp.pad(x0.reshape(-1), (0, pad))
    else:
        h_flat = h.reshape(-1)
        x_flat = x0.reshape(-1)

    rows = (n + pad) // lane
    h2 = h_flat.reshape(rows, lane)
    x2 = x_flat.reshape(rows, lane)

    itemsize = jnp.dtype(h.dtype).itemsize
    tm = _choose_tm(rows, lane, itemsize)
    grid = (pl.cdiv(rows, tm),)

    # VMEM budget derived from the actual tiling: 3 arrays x 2 buffers x tile,
    # plus slack for compiler-internal scratch.  Keeps the tile choice and the
    # compiler budget consistent across v5e/v6e/v7x scoped-VMEM defaults.
    tile_bytes = tm * lane * itemsize
    vmem_limit = max(3 * 2 * tile_bytes + (2 << 20), 8 << 20)

    kwargs = {}
    if donate_h:
        # Alias h (input index 2, after the two SMEM scalars) to the output.
        kwargs["input_output_aliases"] = {2: 0}

    out2 = pl.pallas_call(
        _gate_skip_kernel,
        out_shape=jax.ShapeDtypeStruct((rows, lane), h.dtype),
        grid=grid,
        in_specs=[
            pl.BlockSpec(memory_space=pltpu.SMEM),          # a (fp32 scalar)
            pl.BlockSpec(memory_space=pltpu.SMEM),          # b (fp32 scalar)
            pl.BlockSpec((tm, lane), lambda i: (i, 0)),     # h tile
            pl.BlockSpec((tm, lane), lambda i: (i, 0)),     # x0 tile
        ],
        out_specs=pl.BlockSpec((tm, lane), lambda i: (i, 0)),
        compiler_params=pltpu.CompilerParams(
            dimension_semantics=("parallel",),   # shard grid across v7x's 2 TCs
            vmem_limit_bytes=int(vmem_limit),
        ),
        **kwargs,
    )(a_s, b_s, h2, x2)

    if pad:
        return out2.reshape(-1)[:n].reshape(orig_shape)
    return out2.reshape(orig_shape)


if __name__ == "__main__":
    key = jax.random.PRNGKey(0)
    k1, k2, k3, k4, k5, k6 = jax.random.split(key, 6)

    # Parameter init matching nn.Parameter(torch.tensor(0.0)) / (1.0).
    a = jnp.float32(0.0)
    b = jnp.float32(1.0)

    # Small NCHW tensors, consistent with a residual/skip connection.
    B, C, H, W = 2, 4, 16, 16
    h = jax.random.normal(k1, (B, C, H, W), dtype=jnp.float32)
    x0 = jax.random.normal(k2, (B, C, H, W), dtype=jnp.float32)

    out = jax.block_until_ready(gate_skip(h, x0, a, b))
    ref = a * h + b * x0
    assert out.shape == (B, C, H, W)
    assert jnp.allclose(out, ref, atol=1e-6), "mismatch vs reference (small)"

    # Larger slab: exercises the multi-step grid (rows=1024 -> tm=128, grid=(8,)).
    B2, C2, H2, W2 = 4, 8, 128, 256   # 1,048,576 elems
    h_big = jax.random.normal(k3, (B2, C2, H2, W2), dtype=jnp.float32)
    x_big = jax.random.normal(k4, (B2, C2, H2, W2), dtype=jnp.float32)
    a2 = jnp.float32(0.25)
    b2 = jnp.float32(0.75)
    out_big = jax.block_until_ready(gate_skip(h_big, x_big, a2, b2))
    ref_big = a2 * h_big + b2 * x_big
    assert jnp.allclose(out_big, ref_big, atol=1e-6), "mismatch vs reference (big)"

    # Odd total size: exercises the pad-to-128 path (still the Pallas kernel).
    h_odd = jax.random.normal(k5, (3, 5, 7), dtype=jnp.float32)
    x_odd = jax.random.normal(k6, (3, 5, 7), dtype=jnp.float32)
    out_odd = jax.block_until_ready(gate_skip(h_odd, x_odd, a2, b2))
    ref_odd = a2 * h_odd + b2 * x_odd
    assert out_odd.shape == (3, 5, 7)
    assert jnp.allclose(out_odd, ref_odd, atol=1e-6), "mismatch vs reference (odd)"

    print("KERNEL_OK")
</pallas_src>

<mosaic_0001>
module attributes {stable_mosaic.version = 11 : i64} {
  func.func @_gate_skip_kernel(%arg0: i32, %arg1: memref<1xf32, #tpu.memory_space<smem>>, %arg2: memref<1xf32, #tpu.memory_space<smem>>, %arg3: memref<2x1024xf32, #tpu.memory_space<vmem>>, %arg4: memref<2x1024xf32, #tpu.memory_space<vmem>>, %arg5: memref<2x1024xf32, #tpu.memory_space<vmem>>) attributes {dimension_semantics = [#tpu.dimension_semantics<parallel>], iteration_bounds = array<i64: 1>, scalar_prefetch = 0 : i64, scratch_operands = 0 : i64, tpu.core_type = #tpu.core_type<tc>, window_params = [{transform_indices = @transform_0, window_bounds = array<i64: 1>}, {transform_indices = @transform_1, window_bounds = array<i64: 1>}, {transform_indices = @transform_2, window_bounds = array<i64: 2, 1024>}, {transform_indices = @transform_3, window_bounds = array<i64: 2, 1024>}, {transform_indices = @transform_4, window_bounds = array<i64: 2, 1024>}]} {
    %c0 = arith.constant 0 : index
    %0 = memref.load %arg1[%c0] : memref<1xf32, #tpu.memory_space<smem>>
    %c0_0 = arith.constant 0 : index
    %1 = memref.load %arg2[%c0_0] : memref<1xf32, #tpu.memory_space<smem>>
    %c0_1 = arith.constant 0 : index
    %c0_2 = arith.constant 0 : index
    %2 = vector.load %arg3[%c0_1, %c0_2] : memref<2x1024xf32, #tpu.memory_space<vmem>>, vector<2x1024xf32>
    %c0_3 = arith.constant 0 : index
    %c0_4 = arith.constant 0 : index
    %3 = vector.load %arg4[%c0_3, %c0_4] : memref<2x1024xf32, #tpu.memory_space<vmem>>, vector<2x1024xf32>
    %4 = vector.broadcast %0 : f32 to vector<2x1024xf32>
    %5 = arith.mulf %4, %2 : vector<2x1024xf32>
    %6 = vector.broadcast %1 : f32 to vector<2x1024xf32>
    %7 = arith.mulf %6, %3 : vector<2x1024xf32>
    %8 = arith.addf %5, %7 : vector<2x1024xf32>
    %c0_5 = arith.constant 0 : index
    %c0_6 = arith.constant 0 : index
    %9 = vector.load %arg5[%c0_5, %c0_6] : memref<2x1024xf32, #tpu.memory_space<vmem>>, vector<2x1024xf32>
    tpu.vector_store %arg5[%c0_5, %c0_6], %8 {strides = array<i32>} : memref<2x1024xf32, #tpu.memory_space<vmem>>, vector<2x1024xf32>,
    return
  }
  func.func @transform_0(%arg0: i32) -> i32 {
    %c0_i32 = arith.constant 0 : i32
    %c0_i32_0 = arith.constant 0 : i32
    return %c0_i32 : i32
  }
  func.func @transform_1(%arg0: i32) -> i32 {
    %c0_i32 = arith.constant 0 : i32
    %c0_i32_0 = arith.constant 0 : i32
    return %c0_i32 : i32
  }
  func.func @transform_2(%arg0: i32) -> (i32, i32) {
    %c0_i32 = arith.constant 0 : i32
    %c0_i32_0 = arith.constant 0 : i32
    return %arg0, %c0_i32 : i32, i32
  }
  func.func @transform_3(%arg0: i32) -> (i32, i32) {
    %c0_i32 = arith.constant 0 : i32
    %c0_i32_0 = arith.constant 0 : i32
    return %arg0, %c0_i32 : i32, i32
  }
  func.func @transform_4(%arg0: i32) -> (i32, i32) {
    %c0_i32 = arith.constant 0 : i32
    %c0_i32_0 = arith.constant 0 : i32
    return %arg0, %c0_i32 : i32, i32
  }
}

</mosaic_0001>

<bundles_post_ra>
// kernel: tpu_custom_call.1
= control target key start
LH: loop header
LB: loop body
LE: loop exit
PB: predicated region body
PF: predicated region fallthrough
CT: control target
= control target key end

     0   :  { %11 = vsyncpa [#allocation5], 0  ;;  %s221_s0 = inlined_call_operand.<no memory space> [shape: f32[1], index: 0, kind: input, shape index: {}]   ;;  %s222_s1 = inlined_call_operand.<no memory space> [shape: f32[1], index: 1, kind: input, shape index: {}]   ;;  %s223_s2 = inlined_call_operand.hbm [shape: f32[2,1024], index: 2, kind: input, shape index: {}]   ;;  %s224_s3 = inlined_call_operand.hbm [shape: f32[2,1024], index: 3, kind: input, shape index: {}]   ;;  %s225_s4 = inlined_call_operand.hbm [shape: f32[2,1024], index: 4, kind: output, shape index: {}]  }
   0x1   :  { %12 = vsyncpa [#allocation8], 0 }
   0x2   :  { %13 = vsyncpa [#allocation6], 0  ;;  %s151_s15 = smov [#allocation4]   ;;  %s152_s17 = smov [#allocation7]  }
   0x3   :  { %s24_s16 = sshll.u32 %s151_s15, 4  ;;  %s34_s18 = sshll.u32 %s152_s17, 4  ;;  %s25_s16 = int_to_ptr.vmem [resolvable:$true] %s24_s16  ;;  %s35_s18 = int_to_ptr.vmem [resolvable:$true] %s34_s18 }
   0x4   :  { %s79_s21 = scalar_lea.hbm %s223_s2, 256 }
   0x5   :  { %p80_p0 = scmp.ne.s32.totalorder %s223_s2, %s79_s21  ;;  %p83_p1 = scmp.lt.u32.totalorder %s79_s21, %s223_s2 }
   0x7   :  { %p85_p2 = pnand %p83_p1, %p80_p0 }
   0x9   :  { %88 = shalt.err (!%p85_p2)
}
   0xa   :  { %s89_s26 = scalar_lea.vmem %s25_s16, 256  ;;  %p94_p4 = scmp.lt.s32.totalorder %s25_s16, %s25_s16 }
   0xb   :  { %p90_p3 = scmp.ne.s32.totalorder %s25_s16, %s89_s26  ;;  %p95_p5 = scmp.lt.s32.totalorder %s89_s26, %s89_s26 }
   0xd   :  { %p96_p6 = por %p95_p5, %p94_p4 }
   0xf   :  { %p97_p7 = pnand %p96_p6, %p90_p3 }
  0x11   :  { %100 = shalt.err (!%p97_p7)
}
  0x12   :  { %27 = dma.hbm_to_vmem [thread:$0]  %s223_s2, 256, %s25_s16, [#allocation5]  }
  0x13   :  { %s101_s5 = scalar_lea.hbm %s224_s3, 256 }
  0x14   :  { %p102_p8 = scmp.ne.s32.totalorder %s224_s3, %s101_s5  ;;  %p105_p9 = scmp.lt.u32.totalorder %s101_s5, %s224_s3 }
  0x16   :  { %p107_p10 = pnand %p105_p9, %p102_p8 }
  0x18   :  { %110 = shalt.err (!%p107_p10)
}
  0x19   :  { %s111_s10 = scalar_lea.vmem %s35_s18, 256  ;;  %p116_p12 = scmp.lt.s32.totalorder %s35_s18, %s35_s18 }
  0x1a   :  { %p112_p11 = scmp.ne.s32.totalorder %s35_s18, %s111_s10  ;;  %p117_p13 = scmp.lt.s32.totalorder %s111_s10, %s111_s10 }
  0x1c   :  { %p118_p0 = por %p117_p13, %p116_p12 }
  0x1e   :  { %p119_p1 = pnand %p118_p0, %p112_p11 }
  0x20   :  { %122 = shalt.err (!%p119_p1)
}
  0x21   :  { %37 = dma.hbm_to_vmem [thread:$0]  %s224_s3, 256, %s35_s18, [#allocation8]  }
  0x22   :  { %145 = dma.done.wait [#allocation5], 256  }
  0x23   :  { %146 = vsyncadd [#allocation5], 4294967040 }
  0x24   :  { %147 = dma.done.wait [#allocation8], 256  }
  0x25   :  { %148 = vsyncadd [#allocation8], 4294967040  ;;  %v50_v0 = vstv %s221_s0  ;;  %v53_v1 = vstv %s222_s1  ;;  %v46_v2 = vld [vmem:[#allocation4] sm:$0xff]  ;;  %v48_v3 = vld [vmem:[#allocation7] sm:$0xff]  ;;  %s153_s3 = smov [#allocation9]  }
  0x26   :  { %v47_v4 = vld [vmem:[#allocation4 + $0x8] sm:$0xff]  ;;  %v51_v5 = vmul.f32 %v50_v0, %v46_v2  ;;  %v54_v6 = vmul.f32 %v53_v1, %v48_v3  ;;  %v49_v7 = vld [vmem:[#allocation7 + $0x8] sm:$0xff]  ;;  %s66_s16 = sshll.u32 %s153_s3, 4  ;;  %s67_s16 = int_to_ptr.vmem [resolvable:$true] %s66_s16 }
  0x27   :  { %v52_v8 = vmul.f32 %v50_v0, %v47_v4  ;;  %v55_v9 = vmul.f32 %v53_v1, %v49_v7  ;;  %s123_s0 = scalar_lea.vmem %s67_s16, 256  ;;  %p128_p3 = scmp.lt.s32.totalorder %s67_s16, %s67_s16 }
  0x28   :  { %v56_v10 = vadd.f32 %v54_v6, %v51_v5  ;;  %p124_p2 = scmp.ne.s32.totalorder %s67_s16, %s123_s0  ;;  %p129_p4 = scmp.lt.s32.totalorder %s123_s0, %s123_s0 }
  0x29   :  { %v57_v11 = vadd.f32 %v55_v9, %v52_v8 }
  0x2a   :  { %58 = vst [vmem:[#allocation9] sm:$0xff] %v56_v10  ;;  %p130_p5 = por %p129_p4, %p128_p3 }
  0x2b   :  { %59 = vst [vmem:[#allocation9 + $0x8] sm:$0xff] %v57_v11 }
  0x2c   :  { %p131_p6 = pnand %p130_p5, %p124_p2 }
  0x2e   :  { %134 = shalt.err (!%p131_p6)
}
  0x2f   :  { %s135_s18 = scalar_lea.hbm %s225_s4, 256 }
  0x30   :  { %p136_p7 = scmp.ne.s32.totalorder %s225_s4, %s135_s18  ;;  %p139_p8 = scmp.lt.u32.totalorder %s135_s18, %s225_s4 }
  0x32   :  { %p141_p9 = pnand %p139_p8, %p136_p7 }
  0x34   :  { %144 = shalt.err (!%p141_p9)
}
  0x35   :  { %69 = dma.vmem_to_hbm [thread:$0]  %s67_s16, 256, %s225_s4, [#allocation6]  }
  0x36   :  { %149 = dma.done.wait [#allocation6], 256  }
  0x37   :  { %150 = vsyncadd [#allocation6], 4294967040 }
  0x38   :  { %73 = vsyncpa [#allocation5], 1 }
  0x39   :  { %74 = vsyncpa [#allocation8], 1 }
  0x3a   :  { %75 = vsyncpa [#allocation6], 1 }

</bundles_post_ra>
